<compile_context>
chip_gen: v7x
topology: tpu7x:2x2x1
jax: 0.10.0
libtpu: 0.0.40
codegen_flags: <defaults>
</compile_context>

<pallas_src>
import functools

import jax
import jax.numpy as jnp
from jax.experimental import pallas as pl
from jax.experimental.pallas import tpu as pltpu

_LANE = 128
_SUB = 8


def _round_up(x, m):
    return ((x + m - 1) // m) * m


def _wm_gate_kernel(scal_ref, x_ref, r0_ref, su_ref, out_ref,
                    lhs_ref, r_carry_ref, *, n_stim_p, n_rep):
    """One WM_Gate timestep; grid axis 0 is time (sequential, 'arbitrary')."""
    t = pl.program_id(0)

    @pl.when(t == 0)
    def _init():
        lhs_ref[...] = jnp.zeros_like(lhs_ref)     # rows 2..7 stay zero forever
        r_carry_ref[...] = r0_ref[...]             # initial r_prev

    beta = scal_ref[0]
    bias = scal_ref[1]

    su = su_ref[...]                               # (2, n_rep_p)
    s_row = su[0:1, :]                             # s_t, zero-padded lanes
    u_row = su[1:2, :]                             # Bernoulli uniforms (pad = 1.0)

    # One fused MXU push: LHS row 0 = s_t, row 1 = r_{t-1}; contraction dim is
    # only padded to the sublane multiple (n_stim_p), not 128.
    lhs_ref[0:1, :] = s_row[:, 0:n_stim_p]
    lhs_ref[1:2, :] = r_carry_ref[...][:, 0:n_stim_p]
    vv = jnp.dot(lhs_ref[...], x_ref[...], preferred_element_type=jnp.float32)
    bv = beta * vv[0:1, :]                         # beta * v
    bvp = beta * vv[1:2, :]                        # beta * v_prev

    # Numerically-stable prob: scale num/den by exp(-m), m = max(bv, bvp, 0),
    # so no exp argument is ever positive (no overflow, bias term kept exact).
    m = jnp.maximum(jnp.maximum(bv, bvp), 0.0)
    num = jnp.exp(bv - m) + bias * jnp.exp(-m)
    den = num + jnp.exp(bvp - m)
    prob = num * pl.reciprocal(den, approx=True)

    # Zero the padded lane region so prob is well-defined outside [:n_rep] too.
    n_rep_p = prob.shape[-1]
    if n_rep_p != n_rep:
        lane = jax.lax.broadcasted_iota(jnp.int32, prob.shape, 1)
        prob = jnp.where(lane < n_rep, prob, 0.0)

    # Bernoulli draw: store = (u < prob); r = store * s (all f32).
    store = (u_row < prob).astype(jnp.float32)
    r = store * s_row

    r_carry_ref[...] = r                           # carry for step t + 1
    out_ref[0:1, :] = r
    out_ref[1:2, :] = prob


def wm_gate_scan(X, beta, bias, s_seq, r_init, rng_key=None, uniforms=None):
    """Run T consecutive WM_Gate steps inside a single pallas_call.

    X: (n_stim, n_rep), s_seq: (T, n_stim), r_init: (n_stim,).
    Step 0 uses r_prev = r_init; step t>0 uses step t-1's own r, carried in
    VMEM scratch.  Returns (r_seq, prob_seq), each (T, n_rep).
    """
    X = jnp.asarray(X, jnp.float32)
    s_seq = jnp.asarray(s_seq, jnp.float32)
    r_init = jnp.asarray(r_init, jnp.float32)

    T, n_stim = s_seq.shape
    n_stim_x, n_rep = X.shape
    assert n_stim == n_stim_x, "s / X shape mismatch"
    assert n_stim == n_rep, "r = store * s requires n_stimuli == n_representations"

    n_stim_p = _round_up(n_stim, _SUB)    # contraction dim: sublane multiple only
    n_rep_p = _round_up(n_rep, _LANE)     # lane dim: 128 multiple (unmasked stores)

    # Pad weights once per call (in HER: once per weight update, not per step).
    X_p = jnp.zeros((n_stim_p, n_rep_p), jnp.float32).at[:n_stim, :n_rep].set(X)

    if uniforms is None:
        if rng_key is None:
            rng_key = jax.random.PRNGKey(0)
        uniforms = jax.random.uniform(rng_key, (T, n_rep), dtype=jnp.float32)
    uniforms = jnp.asarray(uniforms, jnp.float32)

    # One (T, 2, n_rep_p) operand per step: row 0 = s_t, row 1 = u_t.
    # u's padded lanes are 1.0 so the padded region never "stores".
    su = jnp.ones((T, 2, n_rep_p), jnp.float32)
    su = su.at[:, 0, :].set(0.0)
    su = su.at[:, 0, :n_stim].set(s_seq)
    su = su.at[:, 1, :n_rep].set(uniforms)

    r0 = jnp.zeros((1, n_rep_p), jnp.float32).at[0, :n_stim].set(r_init)
    scal = jnp.asarray([beta, bias], dtype=jnp.float32)

    kernel = functools.partial(_wm_gate_kernel, n_stim_p=n_stim_p, n_rep=n_rep)

    # VMEM budget: raise the scoped limit only if a large X needs it
    # (no-op at WM_Gate sizes; v5e scoped default is 16 MiB).
    x_bytes = n_stim_p * n_rep_p * 4
    vmem_need = x_bytes + 8 * 2 * n_rep_p * 4 + _SUB * n_stim_p * 4 + (1 << 20)
    cp_kwargs = {"dimension_semantics": ("arbitrary",)}   # time loop is sequential
    if vmem_need > 16 * 1024 * 1024:
        cp_kwargs["vmem_limit_bytes"] = int(min(vmem_need, 100 * 1024 * 1024))

    out = pl.pallas_call(
        kernel,
        grid=(T,),
        out_shape=jax.ShapeDtypeStruct((T, 2, n_rep_p), jnp.float32),
        in_specs=[
            pl.BlockSpec(memory_space=pltpu.MemorySpace.SMEM),            # [beta, bias]
            pl.BlockSpec((n_stim_p, n_rep_p), lambda t: (0, 0)),          # X, VMEM-resident
            pl.BlockSpec((1, n_rep_p), lambda t: (0, 0)),                 # r_init, resident
            pl.BlockSpec((None, 2, n_rep_p), lambda t: (t, 0, 0)),        # [s_t ; u_t]
        ],
        out_specs=pl.BlockSpec((None, 2, n_rep_p), lambda t: (t, 0, 0)),  # [r_t ; prob_t]
        scratch_shapes=[
            pltpu.VMEM((_SUB, n_stim_p), jnp.float32),   # stacked MXU LHS
            pltpu.VMEM((1, n_rep_p), jnp.float32),       # r carried across timesteps
        ],
        compiler_params=pltpu.CompilerParams(**cp_kwargs),
    )(scal, X_p, r0, su)

    r_seq = out[:, 0, :n_rep]
    prob_seq = out[:, 1, :n_rep]
    return r_seq, prob_seq


def wm_gate_forward(X, beta, bias, s, r_prev, eligibility_trace=None,
                    rng_key=None, uniforms=None):
    """Module-faithful single step. `eligibility_trace` is unused (as in PyTorch)."""
    del eligibility_trace
    u = None if uniforms is None else jnp.asarray(uniforms)[None, :]
    r_seq, prob_seq = wm_gate_scan(X, beta, bias, jnp.asarray(s)[None, :], r_prev,
                                   rng_key=rng_key, uniforms=u)
    return r_seq[0], prob_seq[0]


if __name__ == "__main__":
    n_stimuli = n_representations = 32
    beta, bias = 15.0, 0.1
    T = 8

    key = jax.random.PRNGKey(0)
    kx, ks, kr, ke, ku = jax.random.split(key, 5)

    X = 0.05 * jax.random.normal(kx, (n_stimuli, n_representations), dtype=jnp.float32)
    s_seq = jax.random.uniform(ks, (T, n_stimuli), dtype=jnp.float32)
    r_init = jax.random.uniform(kr, (n_stimuli,), dtype=jnp.float32)
    elig = jax.random.uniform(ke, (n_stimuli,), dtype=jnp.float32)
    u_seq = jax.random.uniform(ku, (T, n_representations), dtype=jnp.float32)

    def prob_reference(s, r_prev):
        v = X.T @ s
        vp = X.T @ r_prev
        ev = jnp.exp(beta * v) + bias
        return ev / (ev + jnp.exp(beta * vp))

    # ---- single step (exactly the nn.Module forward) ----
    r1, prob1 = wm_gate_forward(X, beta, bias, s_seq[0], r_init, elig, uniforms=u_seq[0])
    jax.block_until_ready((r1, prob1))

    p_ref = prob_reference(s_seq[0], r_init)
    assert jnp.allclose(prob1, p_ref, atol=5e-3), "single-step prob_store mismatch"
    assert jnp.all((prob1 > 0.0) & (prob1 <= 1.0)), "prob_store must lie in (0, 1]"
    store1 = (u_seq[0] < prob1).astype(jnp.float32)
    assert jnp.allclose(r1, store1 * s_seq[0]), "r must equal bernoulli(prob) * s"

    # ---- fused T-step recurrence (X resident in VMEM, r carried in scratch) ----
    r_seq, prob_seq = wm_gate_scan(X, beta, bias, s_seq, r_init, uniforms=u_seq)
    jax.block_until_ready((r_seq, prob_seq))

    r_prev = r_init
    for t in range(T):
        p_t = prob_reference(s_seq[t], r_prev)
        assert jnp.allclose(prob_seq[t], p_t, atol=5e-3), f"prob mismatch at t={t}"
        store_t = (u_seq[t] < prob_seq[t]).astype(jnp.float32)
        assert jnp.allclose(r_seq[t], store_t * s_seq[t]), f"r mismatch at t={t}"
        r_prev = r_seq[t]

    print("KERNEL_OK")
</pallas_src>

<mosaic_0001>
module attributes {stable_mosaic.version = 11 : i64} {
  func.func @_wm_gate_kernel(%arg0: i32, %arg1: memref<2xf32, #tpu.memory_space<smem>>, %arg2: memref<32x128xf32, #tpu.memory_space<vmem>>, %arg3: memref<1x128xf32, #tpu.memory_space<vmem>>, %arg4: memref<1x2x128xf32, #tpu.memory_space<vmem>>, %arg5: memref<1x2x128xf32, #tpu.memory_space<vmem>>, %arg6: memref<8x32xf32, #tpu.memory_space<vmem>>, %arg7: memref<1x128xf32, #tpu.memory_space<vmem>>) attributes {dimension_semantics = [#tpu.dimension_semantics<arbitrary>], iteration_bounds = array<i64: 1>, scalar_prefetch = 0 : i64, scratch_operands = 2 : i64, tpu.core_type = #tpu.core_type<tc>, window_params = [{transform_indices = @transform_0, window_bounds = array<i64: 2>}, {pipeline_mode = #tpu.pipeline_mode<synchronous>, transform_indices = @transform_1, window_bounds = array<i64: 32, 128>}, {pipeline_mode = #tpu.pipeline_mode<synchronous>, transform_indices = @transform_2, window_bounds = array<i64: 1, 128>}, {transform_indices = @transform_3, window_bounds = array<i64: 1, 2, 128>}, {transform_indices = @transform_4, window_bounds = array<i64: 1, 2, 128>}]} {
    %c0_i32 = arith.constant 0 : i32
    %0 = arith.cmpi eq, %arg0, %c0_i32 : i32
    %1 = arith.extui %0 : i1 to i32
    %c0_i32_0 = arith.constant 0 : i32
    %2 = arith.cmpi ne, %1, %c0_i32_0 : i32
    scf.if %2 {
      %cst_25 = arith.constant 0.000000e+00 : f32
      %55 = vector.broadcast %cst_25 : f32 to vector<8x32xf32>
      %c0_26 = arith.constant 0 : index
      %c0_27 = arith.constant 0 : index
      %56 = vector.load %arg6[%c0_26, %c0_27] : memref<8x32xf32, #tpu.memory_space<vmem>>, vector<8x32xf32>
      tpu.vector_store %arg6[%c0_26, %c0_27], %55 {strides = array<i32>} : memref<8x32xf32, #tpu.memory_space<vmem>>, vector<8x32xf32>,
      %c0_28 = arith.constant 0 : index
      %c0_29 = arith.constant 0 : index
      %57 = vector.load %arg3[%c0_28, %c0_29] : memref<1x128xf32, #tpu.memory_space<vmem>>, vector<1x128xf32>
      %c0_30 = arith.constant 0 : index
      %c0_31 = arith.constant 0 : index
      %58 = vector.load %arg7[%c0_30, %c0_31] : memref<1x128xf32, #tpu.memory_space<vmem>>, vector<1x128xf32>
      tpu.vector_store %arg7[%c0_30, %c0_31], %57 {strides = array<i32>} : memref<1x128xf32, #tpu.memory_space<vmem>>, vector<1x128xf32>,
    } else {
    }
    %c0 = arith.constant 0 : index
    %3 = memref.load %arg1[%c0] : memref<2xf32, #tpu.memory_space<smem>>
    %c1 = arith.constant 1 : index
    %4 = memref.load %arg1[%c1] : memref<2xf32, #tpu.memory_space<smem>>
    %c0_1 = arith.constant 0 : index
    %c0_2 = arith.constant 0 : index
    %c0_3 = arith.constant 0 : index
    %5 = vector.load %arg4[%c0_1, %c0_2, %c0_3] : memref<1x2x128xf32, #tpu.memory_space<vmem>>, vector<1x2x128xf32>
    %6 = vector.shape_cast %5 : vector<1x2x128xf32> to vector<2x128xf32>
    %7 = vector.extract_strided_slice %6 {offsets = [0, 0], sizes = [1, 128], strides = [1, 1]} : vector<2x128xf32> to vector<1x128xf32>
    %8 = vector.extract_strided_slice %6 {offsets = [1, 0], sizes = [1, 128], strides = [1, 1]} : vector<2x128xf32> to vector<1x128xf32>
    %9 = vector.extract_strided_slice %7 {offsets = [0, 0], sizes = [1, 32], strides = [1, 1]} : vector<1x128xf32> to vector<1x32xf32>
    %c0_4 = arith.constant 0 : index
    %c0_5 = arith.constant 0 : index
    %10 = vector.load %arg6[%c0_4, %c0_5] : memref<8x32xf32, #tpu.memory_space<vmem>>, vector<1x32xf32>
    tpu.vector_store %arg6[%c0_4, %c0_5], %9 {strides = array<i32>} : memref<8x32xf32, #tpu.memory_space<vmem>>, vector<1x32xf32>,
    %c0_6 = arith.constant 0 : index
    %c0_7 = arith.constant 0 : index
    %11 = vector.load %arg7[%c0_6, %c0_7] : memref<1x128xf32, #tpu.memory_space<vmem>>, vector<1x128xf32>
    %12 = vector.extract_strided_slice %11 {offsets = [0, 0], sizes = [1, 32], strides = [1, 1]} : vector<1x128xf32> to vector<1x32xf32>
    %c1_8 = arith.constant 1 : index
    %c0_9 = arith.constant 0 : index
    %13 = vector.load %arg6[%c1_8, %c0_9] : memref<8x32xf32, #tpu.memory_space<vmem>>, vector<1x32xf32>
    tpu.vector_store %arg6[%c1_8, %c0_9], %12 {strides = array<i32>} : memref<8x32xf32, #tpu.memory_space<vmem>>, vector<1x32xf32>,
    %c0_10 = arith.constant 0 : index
    %c0_11 = arith.constant 0 : index
    %14 = vector.load %arg6[%c0_10, %c0_11] : memref<8x32xf32, #tpu.memory_space<vmem>>, vector<8x32xf32>
    %c0_12 = arith.constant 0 : index
    %c0_13 = arith.constant 0 : index
    %15 = vector.load %arg2[%c0_12, %c0_13] : memref<32x128xf32, #tpu.memory_space<vmem>>, vector<32x128xf32>
    %cst = arith.constant dense<0.000000e+00> : vector<8x128xf32>
    %16 = tpu.matmul %14, %15, %cst {dimension_numbers = #tpu.dot_dimension_numbers<[1], [0], [0], [1], [0, 0, 1, 1], [], []>} : vector<8x32xf32>, vector<32x128xf32>, vector<8x128xf32> -> vector<8x128xf32>
    %17 = vector.extract_strided_slice %16 {offsets = [0, 0], sizes = [1, 128], strides = [1, 1]} : vector<8x128xf32> to vector<1x128xf32>
    %18 = vector.broadcast %3 : f32 to vector<1x128xf32>
    %19 = arith.mulf %18, %17 : vector<1x128xf32>
    %20 = vector.extract_strided_slice %16 {offsets = [1, 0], sizes = [1, 128], strides = [1, 1]} : vector<8x128xf32> to vector<1x128xf32>
    %21 = vector.broadcast %3 : f32 to vector<1x128xf32>
    %22 = arith.mulf %21, %20 : vector<1x128xf32>
    %23 = arith.maximumf %19, %22 : vector<1x128xf32>
    %cst_14 = arith.constant 0.000000e+00 : f32
    %24 = vector.broadcast %cst_14 : f32 to vector<1x128xf32>
    %25 = arith.maximumf %23, %24 : vector<1x128xf32>
    %26 = arith.subf %19, %25 : vector<1x128xf32>
    %27 = math.exp %26 : vector<1x128xf32>
    %cst_15 = arith.constant 0.000000e+00 : f32
    %28 = vector.broadcast %cst_15 : f32 to vector<1x128xf32>
    %29 = arith.subf %28, %25 : vector<1x128xf32>
    %30 = math.exp %29 : vector<1x128xf32>
    %31 = vector.broadcast %4 : f32 to vector<1x128xf32>
    %32 = arith.mulf %31, %30 : vector<1x128xf32>
    %33 = arith.addf %27, %32 : vector<1x128xf32>
    %34 = arith.subf %22, %25 : vector<1x128xf32>
    %35 = math.exp %34 : vector<1x128xf32>
    %36 = arith.addf %33, %35 : vector<1x128xf32>
    %37 = tpu.reciprocal %36 {approx = true} : vector<1x128xf32> -> vector<1x128xf32>
    %38 = arith.mulf %33, %37 : vector<1x128xf32>
    %39 = tpu.iota {dimensions = array<i32: 1>} : vector<1x128xi32>
    %c32_i32 = arith.constant 32 : i32
    %40 = vector.broadcast %c32_i32 : i32 to vector<1x128xi32>
    %41 = arith.cmpi slt, %39, %40 : vector<1x128xi32>
    %cst_16 = arith.constant 0.000000e+00 : f32
    %42 = vector.broadcast %cst_16 : f32 to vector<1x128xf32>
    %43 = arith.select %41, %38, %42 : vector<1x128xi1>, vector<1x128xf32>
    %44 = arith.cmpf olt, %8, %43 : vector<1x128xf32>
    %45 = arith.extui %44 : vector<1x128xi1> to vector<1x128xi32>
    %46 = arith.sitofp %45 : vector<1x128xi32> to vector<1x128xf32>
    %47 = arith.mulf %46, %7 : vector<1x128xf32>
    %c0_17 = arith.constant 0 : index
    %c0_18 = arith.constant 0 : index
    %48 = vector.load %arg7[%c0_17, %c0_18] : memref<1x128xf32, #tpu.memory_space<vmem>>, vector<1x128xf32>
    tpu.vector_store %arg7[%c0_17, %c0_18], %47 {strides = array<i32>} : memref<1x128xf32, #tpu.memory_space<vmem>>, vector<1x128xf32>,
    %c0_19 = arith.constant 0 : index
    %c0_20 = arith.constant 0 : index
    %c0_21 = arith.constant 0 : index
    %49 = vector.load %arg5[%c0_19, %c0_20, %c0_21] : memref<1x2x128xf32, #tpu.memory_space<vmem>>, vector<1x1x128xf32>
    %50 = vector.shape_cast %49 : vector<1x1x128xf32> to vector<1x128xf32>
    %51 = vector.shape_cast %47 : vector<1x128xf32> to vector<1x1x128xf32>
    tpu.vector_store %arg5[%c0_19, %c0_20, %c0_21], %51 {strides = array<i32>} : memref<1x2x128xf32, #tpu.memory_space<vmem>>, vector<1x1x128xf32>,
    %c0_22 = arith.constant 0 : index
    %c1_23 = arith.constant 1 : index
    %c0_24 = arith.constant 0 : index
    %52 = vector.load %arg5[%c0_22, %c1_23, %c0_24] : memref<1x2x128xf32, #tpu.memory_space<vmem>>, vector<1x1x128xf32>
    %53 = vector.shape_cast %52 : vector<1x1x128xf32> to vector<1x128xf32>
    %54 = vector.shape_cast %43 : vector<1x128xf32> to vector<1x1x128xf32>
    tpu.vector_store %arg5[%c0_22, %c1_23, %c0_24], %54 {strides = array<i32>} : memref<1x2x128xf32, #tpu.memory_space<vmem>>, vector<1x1x128xf32>,
    return
  }
  func.func @transform_0(%arg0: i32) -> i32 {
    %c0_i32 = arith.constant 0 : i32
    %c0_i32_0 = arith.constant 0 : i32
    return %c0_i32 : i32
  }
  func.func @transform_1(%arg0: i32) -> (i32, i32) {
    %c0_i32 = arith.constant 0 : i32
    %c0_i32_0 = arith.constant 0 : i32
    %c0_i32_1 = arith.constant 0 : i32
    return %c0_i32, %c0_i32_0 : i32, i32
  }
  func.func @transform_2(%arg0: i32) -> (i32, i32) {
    %c0_i32 = arith.constant 0 : i32
    %c0_i32_0 = arith.constant 0 : i32
    %c0_i32_1 = arith.constant 0 : i32
    return %c0_i32, %c0_i32_0 : i32, i32
  }
  func.func @transform_3(%arg0: i32) -> (i32, i32, i32) {
    %c0_i32 = arith.constant 0 : i32
    %c0_i32_0 = arith.constant 0 : i32
    %c0_i32_1 = arith.constant 0 : i32
    return %arg0, %c0_i32, %c0_i32_0 : i32, i32, i32
  }
  func.func @transform_4(%arg0: i32) -> (i32, i32, i32) {
    %c0_i32 = arith.constant 0 : i32
    %c0_i32_0 = arith.constant 0 : i32
    %c0_i32_1 = arith.constant 0 : i32
    return %arg0, %c0_i32, %c0_i32_0 : i32, i32, i32
  }
}

</mosaic_0001>

<bundles_post_ra>
// kernel: tpu_custom_call.1
= control target key start
LH: loop header
LB: loop body
LE: loop exit
PB: predicated region body
PF: predicated region fallthrough
CT: control target
= control target key end

     0   :  { %9 = vsyncpa [#allocation7], 0  ;;  %s374_s0 = inlined_call_operand.hbm [shape: f32[2], index: 0, kind: input, shape index: {}]   ;;  %s375_s1 = inlined_call_operand.hbm [shape: f32[32,128], index: 1, kind: input, shape index: {}]   ;;  %s376_s2 = inlined_call_operand.vmem [shape: f32[1,128], index: 2, kind: input, shape index: {}]   ;;  %s377_s3 = inlined_call_operand.vmem [shape: f32[1,2,128], index: 3, kind: input, shape index: {}]   ;;  %s378_s4 = inlined_call_operand.hbm [shape: f32[1,2,128], index: 4, kind: output, shape index: {}]  }
   0x1   :  { %10 = vsyncpa [#allocation5], 0 }
   0x2   :  { %11 = vsyncpa [#allocation6], 0  ;;  %s239_s17 = scalar_lea.hbm %s374_s0, 16 }
   0x3   :  { %p240_p0 = scmp.ne.s32.totalorder %s374_s0, %s239_s17  ;;  %p243_p1 = scmp.lt.u32.totalorder %s239_s17, %s374_s0 }
   0x5   :  { %p245_p2 = pnand %p243_p1, %p240_p0 }
   0x7   :  { %248 = shalt.err (!%p245_p2)
}
   0x8   :  { %s299_s22 = smov [#allocation4]   ;;  %s300_s25 = smov [#allocation8]  }
   0x9   :  { %19 = dma.hbm_to_smem %s374_s0, 16, %s299_s22, [#allocation7]  }
   0xa   :  { %s25_s26 = sshll.u32 %s300_s25, 4  ;;  %s249_s29 = scalar_lea.hbm %s375_s1, 512  ;;  %s26_s26 = int_to_ptr.vmem [resolvable:$true] %s25_s26 }
   0xb   :  { %p250_p3 = scmp.ne.s32.totalorder %s375_s1, %s249_s29  ;;  %p253_p4 = scmp.lt.u32.totalorder %s249_s29, %s375_s1 }
   0xd   :  { %p255_p5 = pnand %p253_p4, %p250_p3 }
   0xf   :  { %258 = shalt.err (!%p255_p5)
}
  0x10   :  { %s259_s8 = scalar_lea.vmem %s26_s26, 512  ;;  %p264_p7 = scmp.lt.s32.totalorder %s26_s26, %s26_s26 }
  0x11   :  { %p260_p6 = scmp.ne.s32.totalorder %s26_s26, %s259_s8  ;;  %p265_p8 = scmp.lt.s32.totalorder %s259_s8, %s259_s8 }
  0x13   :  { %p266_p9 = por %p265_p8, %p264_p7 }
  0x15   :  { %p267_p10 = pnand %p266_p9, %p260_p6 }
  0x17   :  { %270 = shalt.err (!%p267_p10)
}
  0x18   :  { %s301_s0 = smov 128   ;;  %s302_s9 = smov 8  }
  0x19   :  { %31 = dma.hbm_to_vmem [thread:$0]  %s375_s1, 512, %s26_s26, [#allocation5], %s301_s0, %s301_s0, %s302_s9  }
  0x1a   :  { %293 = dma.done.wait [#allocation7], 16  }
  0x1b   :  { %294 = vsyncadd [#allocation7], 4294967280 }
  0x1c   :  { %295 = dma.done.wait [#allocation5], 512  }
  0x1d   :  { %296 = vsyncadd [#allocation5], 4294966784 }
  0x1e   :  { %42 = sfence }
  0x1f   :  { %v59_v0 = vld [vmem:[#allocation8] sm:$0xff]  ;;  %v60_v1 = vld [vmem:[#allocation8 + $0x8] sm:$0xff]  ;;  %v61_v2 = vld [vmem:[#allocation8 + $0x10] sm:$0xff]  ;;  %v303_v3 = vmov 0.0|0.0   ;;  %vm304_vm0 = vmmov 0   ;;  %v305_v6 = vmov 0.0   ;;  %v165_v34 = vlaneseq }
  0x20   :  { %217 = vmatprep.subr.bf16.mxu0 %v303_v3  ;;  %v218_v4 = vpack.c.bf16 %v60_v1, %v59_v0  ;;  %v62_v5 = vld [vmem:[#allocation8 + $0x18] sm:$0xff]  ;;  %214 = vmatprep.mubr.msk.f32.mxu0 %vm304_vm0, %v305_v6  ;;  %vm47_vm1 = vcmask 261120   ;;  %v49_v7 = vld [vmem:[%s376_s2] sm:$0x1]  ;;  %vm54_vm2 = vcmask 253952   ;;  %s51_s15 = sld [smem:[#allocation4]] }
  0x21   :  { %v53_v8 = vld [vmem:[%s377_s3] sm:$0x3]  ;;  %48 = vst.msk [vmem:[#allocation2] sm:$0xff] %vm47_vm1, %v305_v6  ;;  %50 = vst [vmem:[#allocation3] sm:$0x1] %v49_v7  ;;  %v221_v9 = vpack.c.bf16 %v62_v5, %v61_v2  ;;  %s198_s2 = sld [smem:[#allocation4 + $0x1]] }
  0x22   :  { %219 = vmatpush3.bf16.msra.mxu0 %v218_v4  ;;  %55 = vst.msk [vmem:[#allocation2] sm:$0x1] %vm54_vm2, %v53_v8  ;;  %v166_v35 = vand.u32 127, %v165_v34  ;;  %v176_v40 = vrot.slane %v53_v8, 7  ;;  %s306_s3 = smov [#allocation9]  }
  0x23   :  { %220 = vmatprep.subr.bf16.mxu0 %v303_v3  ;;  %s188_s16 = sshll.u32 %s306_s3, 4  ;;  %s189_s16 = int_to_ptr.vmem [resolvable:$true] %s188_s16 }
  0x24   :  { %vm167_vm3 = vcmp.lt.s32.totalorder %v166_v35, 32  ;;  %s271_s17 = scalar_lea.vmem %s189_s16, 32  ;;  %p276_p12 = scmp.lt.s32.totalorder %s189_s16, %s189_s16 }
  0x25   :  { %p272_p11 = scmp.ne.s32.totalorder %s189_s16, %s271_s17  ;;  %p277_p13 = scmp.lt.s32.totalorder %s271_s17, %s271_s17 }
  0x26   :  { %222 = vmatpush3.bf16.msra.mxu0 %v221_v9  ;;  %v137_v12 = vstv %s51_s15 }
  0x27   :  { %v150_v26 = vstv %s198_s2  ;;  %p278_p0 = por %p277_p13, %p276_p12 }
  0x28   :  { %v56_v10 = vld [vmem:[#allocation3] sm:$0x1] }
  0x29   :  { %57 = vst.msk [vmem:[#allocation2 + $0x1] sm:$0x1] %vm54_vm2, %v56_v10  ;;  %p279_p1 = pnand %p278_p0, %p272_p11 }
  0x30   :  { %v58_v11 = vld [vmem:[#allocation2] sm:$0xff] }
  0x31   :  { %215 = vmatmul.mubr.msk.f32.vlgmr.msra.gmra.mrb[0].mxu0 %vm47_vm1, %v58_v11 }
 0x104   :  { %v133_v13 = vpop.f32.mrb[0].mxu0 }
 0x105   :  { %v138_v14 = vmul.f32 %v137_v12, %v133_v13  ;;  %v216_v15 = vpop.f32.mrb[1].mxu0 }
 0x107   :  { %v140_v16 = vrot.slane %v138_v14, 1 }
 0x109   :  { %v142_v17 = vmax.f32 %v138_v14, %v140_v16 }
 0x10b   :  { %v143_v18 = vmax.f32 %v142_v17, 0.0 }
 0x10d   :  { %v144_v19 = vsub.f32 %v138_v14, %v143_v18  ;;  %v147_v20 = vsub.f32 0.0, %v143_v18  ;;  %v154_v21 = vrot.slane %v143_v18, 7 }
 0x10f   :  { %v148_v22 = vmul.f32 1.442695, %v147_v20  ;;  %v156_v23 = vsub.f32 %v138_v14, %v154_v21  ;;  %v145_v24 = vmul.f32 1.442695, %v144_v19 }
 0x111   :  { %v157_v25 = vmul.f32 1.442695, %v156_v23  ;;  %231 = vpow2.f32 %v148_v22 }
 0x113   :  { %233 = vpow2.f32 %v157_v25 }
 0x114   :  { %235 = vpow2.f32 %v145_v24 }
 0x11b   :  { %v232_v27 = vpop.eup %231 }
 0x11c   :  { %v151_v29 = vmul.f32 %v232_v27, %v150_v26 }
 0x11d   :  { %v234_v28 = vpop.eup %233 }
 0x11e   :  { %v236_v30 = vpop.eup %235  ;;  %v160_v31 = vrot.slane %v234_v28, 1 }
 0x11f   :  { %v152_v32 = vadd.f32 %v236_v30, %v151_v29 }
 0x121   :  { %v162_v33 = vadd.f32 %v160_v31, %v152_v32 }
 0x123   :  { %237 = vrcp.f32 %v162_v33 }
 0x12d   :  { %v238_v36 = vpop.eup %237 }
 0x12e   :  { %v164_v37 = vmul.f32 %v238_v36, %v152_v32 }
 0x130   :  { %v168_v38 = vsel %vm167_vm3, %v164_v37, 0.0 }
 0x131   :  { %v170_v39 = vrot.slane %v168_v38, 7  ;;  %181 = vst [vmem:[#allocation9 + $0x1] sm:$0x1] %v168_v38 }
 0x133   :  { %vm172_vm4 = vcmp.lt.f32.partialorder %v53_v8, %v170_v39 }
 0x134   :  { %v200_v41 = vsel %vm172_vm4, 1.0, %v305_v6 }
 0x135   :  { %v178_v42 = vmul.f32 %v200_v41, %v176_v40 }
 0x137   :  { %179 = vst [vmem:[#allocation3 - $0x1] sm:$0x2] %v178_v42  ;;  %180 = vst [vmem:[#allocation9 - $0x1] sm:$0x2] %v178_v42 }
 0x138   :  { %282 = shalt.err (!%p279_p1)
}
 0x139   :  { %s283_s20 = scalar_lea.hbm %s378_s4, 32 }
 0x13a   :  { %p284_p2 = scmp.ne.s32.totalorder %s378_s4, %s283_s20  ;;  %p287_p3 = scmp.lt.u32.totalorder %s283_s20, %s378_s4 }
 0x13c   :  { %p289_p4 = pnand %p287_p3, %p284_p2 }
 0x13e   :  { %292 = shalt.err (!%p289_p4)
}
 0x13f   :  { %191 = dma.vmem_to_hbm [thread:$0]  %s189_s16, 32, %s378_s4, [#allocation6]  }
 0x140   :  { %297 = dma.done.wait [#allocation6], 32  }
 0x141   :  { %298 = vsyncadd [#allocation6], 4294967264 }
 0x142   :  { %195 = vsyncpa [#allocation5], 1 }
 0x143   :  { %196 = vsyncpa [#allocation6], 1 }
 0x144   :  { %197 = vsyncpa [#allocation7], 1 }

</bundles_post_ra>
